<compile_context>
chip_gen: v7x
topology: tpu7x:2x2x1
jax: 0.10.0
libtpu: 0.0.40
codegen_flags: <defaults>
</compile_context>

<pallas_src>
import functools

import jax
import jax.numpy as jnp
from jax import lax
from jax.experimental import pallas as pl
from jax.experimental.pallas import tpu as pltpu


# --------------------------------------------------------------------------- #
# Helpers
# --------------------------------------------------------------------------- #
def _round_up(x, m):
    return -(-x // m) * m


def _tpu_generation():
    try:
        kind = jax.devices()[0].device_kind.lower()
    except Exception:
        return 6
    for g in (7, 6, 5, 4):
        if f"v{g}" in kind:
            return g
    return 6


def _vmem_capacity_bytes(gen):
    try:
        info = pltpu.get_tpu_info()
        cap = getattr(info, "vmem_capacity_bytes", None)
        if cap:
            return int(cap)
    except Exception:
        pass
    return (64 << 20) if gen >= 7 else (128 << 20)


def _quick_gelu(h):
    # quick_gelu: h * sigmoid(1.702 * h); sigmoid written explicitly so the
    # transcendental work (exp + reciprocal) stays on the EUP slot.
    return h * pl.reciprocal(1.0 + jnp.exp(-1.702 * h), approx=True)


# --------------------------------------------------------------------------- #
# Kernels
# --------------------------------------------------------------------------- #
def _resident_kernel(x_ref, w1_ref, b1_ref, w2_ref, b2_ref, o_ref, *, ti):
    """Weights fully VMEM-resident (fetched once); 1-D grid over M tiles.

    The intermediate dim I is chunked by `ti` inside the kernel so the live
    (tm, ti) activation slab stays small while w1/w2 never leave VMEM.
    """
    I = w1_ref.shape[0]
    E = o_ref.shape[1]
    x = x_ref[...]
    tm = x.shape[0]

    # Initialize the f32 accumulator with the fc2 bias (finalize is a pure cast).
    acc = jnp.broadcast_to(b2_ref[...].astype(jnp.float32), (tm, E))

    for j in range(I // ti):
        w1s = w1_ref[pl.ds(j * ti, ti), :]                      # (ti, E)
        # fc1 slab: (tm, E) x (ti, E) contracting E (PyTorch layout, MXU-native).
        h = lax.dot_general(
            x, w1s,
            dimension_numbers=(((1,), (1,)), ((), ())),
            preferred_element_type=jnp.float32,
        )
        h = h + b1_ref[:, pl.ds(j * ti, ti)]
        h = _quick_gelu(h)

        w2s = w2_ref[:, pl.ds(j * ti, ti)]                      # (E, ti)
        # fc2 slab: (tm, ti) x (E, ti) contracting ti; accumulate in f32.
        acc = acc + lax.dot_general(
            h.astype(w2s.dtype), w2s,
            dimension_numbers=(((1,), (1,)), ((), ())),
            preferred_element_type=jnp.float32,
        )

    o_ref[...] = acc.astype(o_ref.dtype)


def _streaming_kernel(x_ref, w1_ref, b1_ref, w2_ref, b2_ref, o_ref, acc_ref):
    """Fallback when weights don't fit VMEM: 2-D grid, I axis innermost,
    (tm, E) f32 accumulator resident across the I reduction."""
    j = pl.program_id(1)

    @pl.when(j == 0)
    def _init():
        acc_ref[...] = jnp.broadcast_to(
            b2_ref[...].astype(jnp.float32), acc_ref.shape)

    h = lax.dot_general(
        x_ref[...], w1_ref[...],
        dimension_numbers=(((1,), (1,)), ((), ())),
        preferred_element_type=jnp.float32,
    )
    h = h + b1_ref[...]
    h = _quick_gelu(h)

    acc_ref[...] += lax.dot_general(
        h.astype(w2_ref.dtype), w2_ref[...],
        dimension_numbers=(((1,), (1,)), ((), ())),
        preferred_element_type=jnp.float32,
    )

    @pl.when(j == pl.num_programs(1) - 1)
    def _finalize():
        o_ref[...] = acc_ref[...].astype(o_ref.dtype)


# --------------------------------------------------------------------------- #
# Wrapper
# --------------------------------------------------------------------------- #
def clip_mlp(x, w1, b1, w2, b2, *, tm=None, ti=None, resident=None):
    """CLIPMLP forward.

    x : (B, S, E)
    w1: (I, E)  fc1 weight, PyTorch nn.Linear layout (out_features, in_features)
    b1: (I,)    fc1 bias
    w2: (E, I)  fc2 weight
    b2: (E,)    fc2 bias
    """
    B, S, E = x.shape
    I, E_in = w1.shape
    assert E_in == E and w2.shape == (E, I)
    M = B * S

    x2d = x.reshape(M, E)            # cheap reshape, no pad / copy
    b1_r = b1.reshape(1, I)
    b2_r = b2.reshape(1, E)

    gen = _tpu_generation()
    vmem_cap = _vmem_capacity_bytes(gen)

    # --- tile sizes --------------------------------------------------------
    if tm is None:
        # Rows per weight fetch past the MXU/HBM crossover per generation.
        tm = {7: 512, 6: 1024, 5: 512}.get(gen, 512)
    tm = max(8, _round_up(min(tm, _round_up(M, 8)), 8))

    if ti is None:
        if I <= 1024:
            ti = I
        else:
            ti = next((c for c in (1024, 512, 256, 128) if I % c == 0), I)
    assert I % ti == 0, "ti must evenly divide the intermediate size I"

    xb = jnp.dtype(x.dtype).itemsize
    wb = jnp.dtype(w1.dtype).itemsize
    weight_bytes = ((w1.size + b1.size) * wb
                    + (w2.size + b2.size) * jnp.dtype(w2.dtype).itemsize)

    # VMEM requirement estimates (weights counted double-buffered, conservatively).
    need_resident = (4 * tm * E * xb            # x + out tiles, double-buffered
                     + 2 * weight_bytes         # full weights
                     + tm * E * 4               # f32 accumulator values
                     + 2 * tm * ti * 4)         # fc1/activation temporaries
    need_streaming = (4 * tm * E * xb
                      + 4 * ti * E * wb + 2 * (ti + E) * wb
                      + tm * E * 4
                      + 2 * tm * ti * 4)

    if resident is None:
        resident = need_resident <= int(0.70 * vmem_cap)

    def _vmem_limit(need):
        limit = max(need * 5 // 4 + (4 << 20), 32 << 20)
        return int(min(limit, vmem_cap))

    grid_m = pl.cdiv(M, tm)

    if resident:
        cost = pl.CostEstimate(
            flops=4 * M * E * I,
            transcendentals=M * I,
            bytes_accessed=2 * M * E * xb + weight_bytes,   # weights fetched once
        )
        out2d = pl.pallas_call(
            functools.partial(_resident_kernel, ti=ti),
            out_shape=jax.ShapeDtypeStruct((M, E), x.dtype),
            grid=(grid_m,),
            in_specs=[
                pl.BlockSpec((tm, E), lambda i: (i, 0)),   # x tile
                pl.BlockSpec((I, E), lambda i: (0, 0)),    # w1, grid-invariant
                pl.BlockSpec((1, I), lambda i: (0, 0)),    # b1, grid-invariant
                pl.BlockSpec((E, I), lambda i: (0, 0)),    # w2, grid-invariant
                pl.BlockSpec((1, E), lambda i: (0, 0)),    # b2, grid-invariant
            ],
            out_specs=pl.BlockSpec((tm, E), lambda i: (i, 0)),
            compiler_params=pltpu.CompilerParams(
                dimension_semantics=("parallel",),
                vmem_limit_bytes=_vmem_limit(need_resident),
            ),
            cost_estimate=cost,
        )(x2d, w1, b1_r, w2, b2_r)
    else:
        cost = pl.CostEstimate(
            flops=4 * M * E * I,
            transcendentals=M * I,
            # Weights are re-streamed once per M tile in this configuration.
            bytes_accessed=2 * M * E * xb + weight_bytes * grid_m,
        )
        out2d = pl.pallas_call(
            _streaming_kernel,
            out_shape=jax.ShapeDtypeStruct((M, E), x.dtype),
            grid=(grid_m, I // ti),
            in_specs=[
                pl.BlockSpec((tm, E), lambda i, j: (i, 0)),   # x tile
                pl.BlockSpec((ti, E), lambda i, j: (j, 0)),   # w1 slab (I, E)
                pl.BlockSpec((1, ti), lambda i, j: (0, j)),   # b1 slab
                pl.BlockSpec((E, ti), lambda i, j: (0, j)),   # w2 slab (E, I)
                pl.BlockSpec((1, E), lambda i, j: (0, 0)),    # b2
            ],
            out_specs=pl.BlockSpec((tm, E), lambda i, j: (i, 0)),
            scratch_shapes=[pltpu.VMEM((tm, E), jnp.float32)],
            compiler_params=pltpu.CompilerParams(
                dimension_semantics=("parallel", "arbitrary"),
                vmem_limit_bytes=_vmem_limit(need_streaming),
            ),
            cost_estimate=cost,
        )(x2d, w1, b1_r, w2, b2_r)

    return out2d.reshape(B, S, E)


# --------------------------------------------------------------------------- #
# Reference and self-test
# --------------------------------------------------------------------------- #
def reference(x, w1, b1, w2, b2):
    h = jnp.einsum("bse,ie->bsi", x, w1) + b1
    h = h * jax.nn.sigmoid(1.702 * h)
    return jnp.einsum("bsi,ei->bse", h, w2) + b2


if __name__ == "__main__":
    key = jax.random.PRNGKey(0)
    kx, k1, k2, k3, k4, kx2 = jax.random.split(key, 6)

    # Small shapes consistent with CLIPMLP: embed_dim=32, intermediate=256,
    # activation='quick_gelu', dtype=float32.
    B, S, E, I = 2, 8, 32, 256
    x = jax.random.normal(kx, (B, S, E), dtype=jnp.float32)
    # PyTorch nn.Linear weight layout: (out_features, in_features)
    w1 = jax.random.normal(k1, (I, E), dtype=jnp.float32) * 0.05
    b1 = jax.random.normal(k2, (I,), dtype=jnp.float32) * 0.05
    w2 = jax.random.normal(k3, (E, I), dtype=jnp.float32) * 0.05
    b2 = jax.random.normal(k4, (E,), dtype=jnp.float32) * 0.05

    ref = reference(x, w1, b1, w2, b2)

    # 1) Default configuration -> resident-weight kernel (weights fetched once).
    out = clip_mlp(x, w1, b1, w2, b2)
    jax.block_until_ready(out)
    assert out.shape == (B, S, E)
    assert jnp.allclose(out, ref, atol=1e-3, rtol=1e-3), "mismatch (resident)"

    # 2) M not a multiple of the row tile -> partial last block, no wrapper pad.
    B2, S2 = 3, 7
    x2 = jax.random.normal(kx2, (B2, S2, E), dtype=jnp.float32)
    out2 = clip_mlp(x2, w1, b1, w2, b2)
    jax.block_until_ready(out2)
    assert out2.shape == (B2, S2, E)
    assert jnp.allclose(out2, reference(x2, w1, b1, w2, b2),
                        atol=1e-3, rtol=1e-3), "mismatch (partial block)"

    # 3) Force the streaming/accumulator path (multi-step reduction over I).
    out3 = clip_mlp(x, w1, b1, w2, b2, ti=128, resident=False)
    jax.block_until_ready(out3)
    assert jnp.allclose(out3, ref, atol=1e-3, rtol=1e-3), "mismatch (streaming)"

    print("KERNEL_OK")
</pallas_src>

<mosaic_0001>
module attributes {stable_mosaic.version = 11 : i64} {
  func.func @_resident_kernel(%arg0: i32, %arg1: memref<16x32xf32, #tpu.memory_space<vmem>>, %arg2: memref<256x32xf32, #tpu.memory_space<vmem>>, %arg3: memref<1x256xf32, #tpu.memory_space<vmem>>, %arg4: memref<32x256xf32, #tpu.memory_space<vmem>>, %arg5: memref<1x32xf32, #tpu.memory_space<vmem>>, %arg6: memref<16x32xf32, #tpu.memory_space<vmem>>) attributes {dimension_semantics = [#tpu.dimension_semantics<parallel>], iteration_bounds = array<i64: 1>, scalar_prefetch = 0 : i64, scratch_operands = 0 : i64, tpu.core_type = #tpu.core_type<tc>, window_params = [{transform_indices = @transform_0, window_bounds = array<i64: 16, 32>}, {pipeline_mode = #tpu.pipeline_mode<synchronous>, transform_indices = @transform_1, window_bounds = array<i64: 256, 32>}, {pipeline_mode = #tpu.pipeline_mode<synchronous>, transform_indices = @transform_2, window_bounds = array<i64: 1, 256>}, {pipeline_mode = #tpu.pipeline_mode<synchronous>, transform_indices = @transform_3, window_bounds = array<i64: 32, 256>}, {pipeline_mode = #tpu.pipeline_mode<synchronous>, transform_indices = @transform_4, window_bounds = array<i64: 1, 32>}, {transform_indices = @transform_5, window_bounds = array<i64: 16, 32>}]} {
    %c0 = arith.constant 0 : index
    %c0_0 = arith.constant 0 : index
    %0 = vector.load %arg1[%c0, %c0_0] : memref<16x32xf32, #tpu.memory_space<vmem>>, vector<16x32xf32>
    %c0_1 = arith.constant 0 : index
    %c0_2 = arith.constant 0 : index
    %1 = vector.load %arg5[%c0_1, %c0_2] : memref<1x32xf32, #tpu.memory_space<vmem>>, vector<1x32xf32>
    %2 = vector.shape_cast %1 : vector<1x32xf32> to vector<1x32xf32>
    %3 = vector.broadcast %2 : vector<1x32xf32> to vector<16x32xf32>
    %c0_3 = arith.constant 0 : index
    %c0_4 = arith.constant 0 : index
    %4 = vector.load %arg2[%c0_3, %c0_4] : memref<256x32xf32, #tpu.memory_space<vmem>>, vector<256x32xf32>
    %cst = arith.constant dense<0.000000e+00> : vector<16x256xf32>
    %5 = tpu.matmul %0, %4, %cst {dimension_numbers = #tpu.dot_dimension_numbers<[1], [1], [0], [0], [0, 0, 1, 0], [], []>} : vector<16x32xf32>, vector<256x32xf32>, vector<16x256xf32> -> vector<16x256xf32>
    %c0_5 = arith.constant 0 : index
    %c0_6 = arith.constant 0 : index
    %6 = vector.load %arg3[%c0_5, %c0_6] : memref<1x256xf32, #tpu.memory_space<vmem>>, vector<1x256xf32>
    %7 = vector.broadcast %6 : vector<1x256xf32> to vector<16x256xf32>
    %8 = arith.addf %5, %7 : vector<16x256xf32>
    %cst_7 = arith.constant -1.702000e+00 : f32
    %9 = vector.broadcast %cst_7 : f32 to vector<16x256xf32>
    %10 = arith.mulf %9, %8 : vector<16x256xf32>
    %11 = math.exp %10 : vector<16x256xf32>
    %cst_8 = arith.constant 1.000000e+00 : f32
    %12 = vector.broadcast %cst_8 : f32 to vector<16x256xf32>
    %13 = arith.addf %12, %11 : vector<16x256xf32>
    %14 = tpu.reciprocal %13 {approx = true} : vector<16x256xf32> -> vector<16x256xf32>
    %15 = arith.mulf %8, %14 : vector<16x256xf32>
    %c0_9 = arith.constant 0 : index
    %c0_10 = arith.constant 0 : index
    %16 = vector.load %arg4[%c0_9, %c0_10] : memref<32x256xf32, #tpu.memory_space<vmem>>, vector<32x256xf32>
    %cst_11 = arith.constant dense<0.000000e+00> : vector<16x32xf32>
    %17 = tpu.matmul %15, %16, %cst_11 {dimension_numbers = #tpu.dot_dimension_numbers<[1], [1], [0], [0], [0, 0, 1, 0], [], []>} : vector<16x256xf32>, vector<32x256xf32>, vector<16x32xf32> -> vector<16x32xf32>
    %18 = arith.addf %3, %17 : vector<16x32xf32>
    %c0_12 = arith.constant 0 : index
    %c0_13 = arith.constant 0 : index
    %19 = vector.load %arg6[%c0_12, %c0_13] : memref<16x32xf32, #tpu.memory_space<vmem>>, vector<16x32xf32>
    tpu.vector_store %arg6[%c0_12, %c0_13], %18 {strides = array<i32>} : memref<16x32xf32, #tpu.memory_space<vmem>>, vector<16x32xf32>,
    return
  }
  func.func @transform_0(%arg0: i32) -> (i32, i32) {
    %c0_i32 = arith.constant 0 : i32
    %c0_i32_0 = arith.constant 0 : i32
    return %arg0, %c0_i32 : i32, i32
  }
  func.func @transform_1(%arg0: i32) -> (i32, i32) {
    %c0_i32 = arith.constant 0 : i32
    %c0_i32_0 = arith.constant 0 : i32
    %c0_i32_1 = arith.constant 0 : i32
    return %c0_i32, %c0_i32_0 : i32, i32
  }
  func.func @transform_2(%arg0: i32) -> (i32, i32) {
    %c0_i32 = arith.constant 0 : i32
    %c0_i32_0 = arith.constant 0 : i32
    %c0_i32_1 = arith.constant 0 : i32
    return %c0_i32, %c0_i32_0 : i32, i32
  }
  func.func @transform_3(%arg0: i32) -> (i32, i32) {
    %c0_i32 = arith.constant 0 : i32
    %c0_i32_0 = arith.constant 0 : i32
    %c0_i32_1 = arith.constant 0 : i32
    return %c0_i32, %c0_i32_0 : i32, i32
  }
  func.func @transform_4(%arg0: i32) -> (i32, i32) {
    %c0_i32 = arith.constant 0 : i32
    %c0_i32_0 = arith.constant 0 : i32
    %c0_i32_1 = arith.constant 0 : i32
    return %c0_i32, %c0_i32_0 : i32, i32
  }
  func.func @transform_5(%arg0: i32) -> (i32, i32) {
    %c0_i32 = arith.constant 0 : i32
    %c0_i32_0 = arith.constant 0 : i32
    return %arg0, %c0_i32 : i32, i32
  }
}

</mosaic_0001>

<bundles_post_ra>
// kernel: tpu_custom_call.1
= control target key start
LH: loop header
LB: loop body
LE: loop exit
PB: predicated region body
PF: predicated region fallthrough
CT: control target
= control target key end

     0   :  { %vm74_vm0 = vcmask 261120   ;;  %s772_s0 = inlined_call_operand.vmem [shape: f32[16,32], index: 0, kind: input, shape index: {}]   ;;  %s773_s1 = inlined_call_operand.vmem [shape: f32[256,32], index: 1, kind: input, shape index: {}]   ;;  %s774_s2 = inlined_call_operand.vmem [shape: f32[1,256], index: 2, kind: input, shape index: {}]   ;;  %s775_s3 = inlined_call_operand.vmem [shape: f32[32,256], index: 3, kind: input, shape index: {}]   ;;  %s776_s4 = inlined_call_operand.vmem [shape: f32[1,32], index: 4, kind: input, shape index: {}]   ;;  %s777_s5 = inlined_call_operand.hbm [shape: f32[16,32], index: 5, kind: output, shape index: {}]  }
   0x1   :  { %v46_v0 = vld [vmem:[%s773_s1 + $0x80] sm:$0xff]  ;;  %v47_v1 = vld [vmem:[%s773_s1 + $0x88] sm:$0xff]  ;;  %vm595_vm1 = vmpackc.low %vm74_vm0, %vm74_vm0 }
   0x2   :  { %v30_v2 = vld [vmem:[%s773_s1] sm:$0xff]  ;;  %v452_v3 = vpack.c.bf16 %v47_v1, %v46_v0  ;;  %v31_v5 = vld [vmem:[%s773_s1 + $0x8] sm:$0xff]  ;;  %v48_v6 = vld [vmem:[%s773_s1 + $0x90] sm:$0xff] }
   0x3   :  { %v455_v7 = vpack.c.bf16 %v31_v5, %v30_v2  ;;  %v49_v8 = vld [vmem:[%s773_s1 + $0x98] sm:$0xff]  ;;  %v32_v10 = vld [vmem:[%s773_s1 + $0x10] sm:$0xff]  ;;  %v50_v12 = vld [vmem:[%s773_s1 + $0xa0] sm:$0xff] }
   0x4   :  { %454 = vmatprep.subr.msk.bf16.mxu0 %vm595_vm1, %v452_v3  ;;  %v458_v9 = vpack.c.bf16 %v49_v8, %v48_v6  ;;  %v33_v11 = vld [vmem:[%s773_s1 + $0x18] sm:$0xff]  ;;  %v51_v13 = vld [vmem:[%s773_s1 + $0xa8] sm:$0xff]  ;;  %v21_v16 = vld [vmem:[%s772_s0] sm:$0xff] }
   0x5   :  { %457 = vmatpush3.bf16.xpose.msk.msra.mxu0 %vm595_vm1, %v455_v7  ;;  %v461_v14 = vpack.c.bf16 %v33_v11, %v32_v10  ;;  %v464_v15 = vpack.c.bf16 %v51_v13, %v50_v12  ;;  %448 = vmatprep.mubr.msk.f32.mxu0 %vm74_vm0, %v21_v16 }
   0x6   :  { %460 = vmatprep.subr.msk.bf16.mxu0 %vm595_vm1, %v458_v9 }
   0xd   :  { %463 = vmatpush3.bf16.xpose.msk.msra.mxu0 %vm595_vm1, %v461_v14 }
   0xe   :  { %10 = vsyncpa [#allocation3], 0  ;;  %466 = vmatprep.subr.msk.bf16.mxu0 %vm595_vm1, %v464_v15  ;;  %v34_v17 = vld [vmem:[%s773_s1 + $0x20] sm:$0xff]  ;;  %v35_v18 = vld [vmem:[%s773_s1 + $0x28] sm:$0xff]  ;;  %v64_v63 = vlaneseq  ;;  %s551_s27 = smov [#allocation2]  }
   0xf   :  { %v52_v19 = vld [vmem:[%s773_s1 + $0xb0] sm:$0xff]  ;;  %v53_v20 = vld [vmem:[%s773_s1 + $0xb8] sm:$0xff]  ;;  %v467_v21 = vpack.c.bf16 %v35_v18, %v34_v17  ;;  %v54_v25 = vld [vmem:[%s773_s1 + $0xc0] sm:$0xff]  ;;  %s370_s28 = sshll.u32 %s551_s27, 4  ;;  %s371_s28 = int_to_ptr.vmem [resolvable:$true] %s370_s28 }
  0x10   :  { %v470_v22 = vpack.c.bf16 %v53_v20, %v52_v19  ;;  %v36_v23 = vld [vmem:[%s773_s1 + $0x30] sm:$0xff]  ;;  %v37_v24 = vld [vmem:[%s773_s1 + $0x38] sm:$0xff]  ;;  %v55_v26 = vld [vmem:[%s773_s1 + $0xc8] sm:$0xff]  ;;  %v65_v0 = vshrl.u32 %v64_v63, 7  ;;  %s527_s29 = scalar_lea.vmem %s371_s28, 256  ;;  %p532_p1 = scmp.lt.s32.totalorder %s371_s28, %s371_s28 }
  0x11   :  { %v473_v27 = vpack.c.bf16 %v37_v24, %v36_v23  ;;  %v476_v28 = vpack.c.bf16 %v55_v26, %v54_v25  ;;  %v38_v29 = vld [vmem:[%s773_s1 + $0x40] sm:$0xff]  ;;  %v39_v30 = vld [vmem:[%s773_s1 + $0x48] sm:$0xff]  ;;  %v56_v31 = vld [vmem:[%s773_s1 + $0xd0] sm:$0xff]  ;;  %p528_p0 = scmp.ne.s32.totalorder %s371_s28, %s527_s29  ;;  %p533_p2 = scmp.lt.s32.totalorder %s527_s29, %s527_s29 }
  0x12   :  { %v57_v32 = vld [vmem:[%s773_s1 + $0xd8] sm:$0xff]  ;;  %v479_v33 = vpack.c.bf16 %v39_v30, %v38_v29  ;;  %v40_v35 = vld [vmem:[%s773_s1 + $0x50] sm:$0xff]  ;;  %v58_v37 = vld [vmem:[%s773_s1 + $0xe0] sm:$0xff]  ;;  %v66_v1 = vsub.s32 0, %v65_v0  ;;  %v70_v3 = vsub.s32 1, %v65_v0 }
  0x13   :  { %v482_v34 = vpack.c.bf16 %v57_v32, %v56_v31  ;;  %v41_v36 = vld [vmem:[%s773_s1 + $0x58] sm:$0xff]  ;;  %v59_v38 = vld [vmem:[%s773_s1 + $0xe8] sm:$0xff]  ;;  %v42_v41 = vld [vmem:[%s773_s1 + $0x60] sm:$0xff]  ;;  %p534_p3 = por %p533_p2, %p532_p1 }
  0x14   :  { %v485_v39 = vpack.c.bf16 %v41_v36, %v40_v35  ;;  %v488_v40 = vpack.c.bf16 %v59_v38, %v58_v37  ;;  %v43_v42 = vld [vmem:[%s773_s1 + $0x68] sm:$0xff]  ;;  %v60_v43 = vld [vmem:[%s773_s1 + $0xf0] sm:$0xff]  ;;  %v61_v44 = vld [vmem:[%s773_s1 + $0xf8] sm:$0xff] }
  0x15   :  { %469 = vmatpush3.bf16.xpose.msk.msra.mxu0 %vm595_vm1, %v467_v21  ;;  %v491_v45 = vpack.c.bf16 %v43_v42, %v42_v41  ;;  %v494_v46 = vpack.c.bf16 %v61_v44, %v60_v43  ;;  %v44_v47 = vld [vmem:[%s773_s1 + $0x70] sm:$0xff]  ;;  %v45_v48 = vld [vmem:[%s773_s1 + $0x78] sm:$0xff]  ;;  %v22_v50 = vld [vmem:[%s772_s0 + $0x8] sm:$0xff]  ;;  %p535_p4 = pnand %p534_p3, %p528_p0 }
  0x16   :  { %472 = vmatprep.subr.msk.bf16.mxu0 %vm595_vm1, %v470_v22  ;;  %v497_v49 = vpack.c.bf16 %v45_v48, %v44_v47  ;;  %v279_v51 = vld [vmem:[%s775_s3 + $0x8] sm:$0xff]  ;;  %v281_v52 = vld [vmem:[%s775_s3 + $0x18] sm:$0xff]  ;;  %v278_v54 = vld [vmem:[%s775_s3] sm:$0xff] }
  0x17   :  { %v500_v53 = vpack.c.bf16 %v281_v52, %v279_v51  ;;  %v280_v55 = vld [vmem:[%s775_s3 + $0x10] sm:$0xff]  ;;  %v283_v57 = vld [vmem:[%s775_s3 + $0x28] sm:$0xff]  ;;  %v285_v58 = vld [vmem:[%s775_s3 + $0x38] sm:$0xff] }
  0x18   :  { %v502_v56 = vpack.c.bf16 %v280_v55, %v278_v54  ;;  %v504_v59 = vpack.c.bf16 %v285_v58, %v283_v57  ;;  %v282_v60 = vld [vmem:[%s775_s3 + $0x20] sm:$0xff]  ;;  %v284_v61 = vld [vmem:[%s775_s3 + $0x30] sm:$0xff] }
  0x19   :  { %501 = vmatprep.subr.bf16.mxu1 %v500_v53  ;;  %v506_v62 = vpack.c.bf16 %v284_v61, %v282_v60  ;;  %v62_v2 = vld [vmem:[%s774_s2] sm:$0x3] }
  0x1a   :  { %503 = vmatpush1.bf16.xpose.msra.mxu1 %v502_v56  ;;  %v67_v4 = vrot.slane %v62_v2, %v66_v1  ;;  %v71_v5 = vrot.slane %v62_v2, %v70_v3  ;;  %v381_v38 = vld [vmem:[%s776_s4] ss:$0 sm:$0xff] }
  0x1b   :  { %505 = vmatprep.subr.bf16.mxu1 %v504_v59 }
  0x1d   :  { %475 = vmatpush3.bf16.xpose.msk.msra.mxu0 %vm595_vm1, %v473_v27 }
  0x1e   :  { %478 = vmatprep.subr.msk.bf16.mxu0 %vm595_vm1, %v476_v28 }
  0x22   :  { %507 = vmatpush1.bf16.xpose.msra.mxu1 %v506_v62 }
  0x25   :  { %481 = vmatpush3.bf16.xpose.msk.msra.mxu0 %vm595_vm1, %v479_v33 }
  0x26   :  { %484 = vmatprep.subr.msk.bf16.mxu0 %vm595_vm1, %v482_v34 }
  0x2d   :  { %487 = vmatpush3.bf16.xpose.msk.msra.mxu0 %vm595_vm1, %v485_v39 }
  0x2e   :  { %490 = vmatprep.subr.msk.bf16.mxu0 %vm595_vm1, %v488_v40 }
  0x35   :  { %493 = vmatpush3.bf16.xpose.msk.msra.mxu0 %vm595_vm1, %v491_v45 }
  0x36   :  { %496 = vmatprep.subr.msk.bf16.mxu0 %vm595_vm1, %v494_v46 }
  0x3d   :  { %499 = vmatpush3.bf16.xpose.msk.msra.mxu0 %vm595_vm1, %v497_v49 }
  0x44   :  { %449 = vmatmul.mubr.msk.f32.vlgmr.msra.gmra.mrb[0].mxu0 %vm74_vm0, %v21_v16 }
  0x45   :  { %450 = vmatprep.mubr.msk.f32.mxu0 %vm74_vm0, %v22_v50 }
  0x48   :  { %451 = vmatmul.mubr.msk.f32.gmra.mrb[2].mxu0 %vm74_vm0, %v22_v50 }
 0x117   :  { %v243_v6 = vpop.f32.mrb[0].mxu0 }
 0x118   :  { %v244_v7 = vadd.f32 %v243_v6, %v67_v4  ;;  %v245_v8 = vpop.f32.mrb[1].mxu0 }
 0x119   :  { %v246_v9 = vadd.f32 %v245_v8, %v71_v5 }
 0x11a   :  { %v254_v10 = vmul.f32 -1.702, %v244_v7 }
 0x11b   :  { %v255_v11 = vmul.f32 -1.702, %v246_v9  ;;  %v249_v12 = vpop.f32.mrb[2].mxu0 }
 0x11c   :  { %v258_v13 = vmul.f32 1.442695, %v254_v10  ;;  %v250_v14 = vadd.f32 %v249_v12, %v67_v4  ;;  %v251_v15 = vpop.f32.mrb[3].mxu0 }
 0x11d   :  { %v260_v16 = vmul.f32 1.442695, %v255_v11  ;;  %v252_v17 = vadd.f32 %v251_v15, %v71_v5 }
 0x11e   :  { %511 = vpow2.f32 %v258_v13  ;;  %v256_v18 = vmul.f32 -1.702, %v250_v14 }
 0x11f   :  { %513 = vpow2.f32 %v260_v16  ;;  %v257_v19 = vmul.f32 -1.702, %v252_v17 }
 0x120   :  { %v262_v20 = vmul.f32 1.442695, %v256_v18 }
 0x121   :  { %v264_v21 = vmul.f32 1.442695, %v257_v19 }
 0x122   :  { %515 = vpow2.f32 %v262_v20 }
 0x123   :  { %517 = vpow2.f32 %v264_v21 }
 0x128   :  { %v512_v22 = vpop.eup %511 }
 0x129   :  { %v514_v23 = vpop.eup %513  ;;  %v266_v24 = vadd.f32 1.0, %v512_v22 }
 0x12a   :  { %v267_v25 = vadd.f32 1.0, %v514_v23 }
 0x12b   :  { %519 = vrcp.f32 %v266_v24 }
 0x12c   :  { %v516_v26 = vpop.eup %515  ;;  %521 = vrcp.f32 %v267_v25 }
 0x12d   :  { %v518_v27 = vpop.eup %517  ;;  %v268_v28 = vadd.f32 1.0, %v516_v26 }
 0x12e   :  { %v269_v29 = vadd.f32 1.0, %v518_v27 }
 0x12f   :  { %523 = vrcp.f32 %v268_v28 }
 0x130   :  { %525 = vrcp.f32 %v269_v29 }
 0x135   :  { %v520_v30 = vpop.eup %519 }
 0x136   :  { %v522_v31 = vpop.eup %521  ;;  %v274_v33 = vmul.f32 %v520_v30, %v244_v7 }
 0x137   :  { %v275_v32 = vmul.f32 %v522_v31, %v246_v9 }
 0x139   :  { %v524_v34 = vpop.eup %523  ;;  %350 = vmatprep.mubr.f32.mxu1 %v275_v32 }
 0x13a   :  { %v526_v35 = vpop.eup %525  ;;  %351 = vmatmul.mubr.f32.vlgmr.msra.gmra.mrb[0].mxu1 %v274_v33  ;;  %v276_v37 = vmul.f32 %v524_v34, %v250_v14 }
 0x13b   :  { %v277_v36 = vmul.f32 %v526_v35, %v252_v17 }
 0x13d   :  { %355 = vmatprep.mubr.f32.mxu1 %v277_v36 }
 0x13e   :  { %356 = vmatmul.mubr.f32.gmra.mrb[2].mxu1 %v276_v37 }
 0x20d   :  { %v352_v39 = vpop.f32.mrb[0].mxu1 }
 0x20e   :  { %v361_v40 = vadd.f32 %v381_v38, %v352_v39  ;;  %v354_v41 = vpop.f32.mrb[1].mxu1 }
 0x210   :  { %363 = vst.msk [vmem:[#allocation2] sm:$0xff] %vm74_vm0, %v361_v40 }
 0x211   :  { %v357_v42 = vpop.f32.mrb[2].mxu1 }
 0x212   :  { %v362_v43 = vadd.f32 %v381_v38, %v357_v42  ;;  %v359_v44 = vpop.f32.mrb[3].mxu1 }
 0x214   :  { %364 = vst.msk [vmem:[#allocation2 + $0x8] sm:$0xff] %vm74_vm0, %v362_v43 }
 0x215   :  { %538 = shalt.err (!%p535_p4)
}
 0x216   :  { %s539_s6 = scalar_lea.hbm %s777_s5, 256 }
 0x217   :  { %p540_p5 = scmp.ne.s32.totalorder %s777_s5, %s539_s6  ;;  %p543_p6 = scmp.lt.u32.totalorder %s539_s6, %s777_s5 }
 0x219   :  { %p545_p7 = pnand %p543_p6, %p540_p5 }
 0x21b   :  { %548 = shalt.err (!%p545_p7)
}
 0x21c   :  { %s552_s11 = smov 128   ;;  %s553_s12 = smov 8  }
 0x21d   :  { %376 = dma.vmem_to_hbm [thread:$0]  %s371_s28, 256, %s777_s5, [#allocation3], %s552_s11, %s552_s11, %s553_s12  }
 0x21e   :  { %549 = dma.done.wait [#allocation3], 256  }
 0x21f   :  { %550 = vsyncadd [#allocation3], 4294967040 }
 0x220   :  { %380 = vsyncpa [#allocation3], 1 }

</bundles_post_ra>
